<compile_context>
chip_gen: v6e
topology: v6e:2x2x1
jax: 0.10.0
libtpu: 0.0.40
codegen_flags: <defaults>
</compile_context>

<pallas_src>
import functools
import math

import jax
import jax.numpy as jnp
from jax.experimental import pallas as pl
from jax.experimental.pallas import tpu as pltpu


@functools.lru_cache(maxsize=None)
def _vmem_limit_bytes():
    """Generation-aware scoped-VMEM budget.

    Safe default (48 MiB) fits v7x's 64 MiB/TC; raised toward v5e/v6e's
    128 MiB when the hardware can be queried."""
    limit = 48 * 1024 * 1024
    try:
        cap = int(pltpu.get_tpu_info().vmem_capacity_bytes)
        if cap > 0:
            limit = min(cap * 3 // 4, 100 * 1024 * 1024)
    except Exception:
        pass
    return limit


# ----------------------------------------------------------------------------
# Parameter preparation (done ONCE at init, not per forward call)
# ----------------------------------------------------------------------------
def prepare_params(params, n_heads):
    """Fold the module's head split/merge AND the softmax scaling into weights.

    Packed layout: feature column h*d_per_head + d of q/k/v (and of the
    attention output fed to W_O) belongs to head h, feature d.  This matches
    the PyTorch 'b h t d -> t b (h d)' recombine exactly, so W_O only needs a
    transpose, and every kernel's last dim is d_model (lane-dense)."""
    d_model = params["W_Q"].shape[0]
    assert d_model % n_heads == 0
    dph = d_model // n_heads
    scaling = float(dph) ** (-0.5)

    def packed(w):
        # PyTorch Linear: y = x @ w.T ; '(d h)' split (head index innermost)
        # puts head h at output rows h, h+n_heads, ...; repack head-major.
        return jnp.concatenate([w[h::n_heads, :].T for h in range(n_heads)], axis=1)

    w_qkv = jnp.concatenate(
        [packed(params["W_Q"]) * scaling,   # fold 1/sqrt(dph) into W_Q (free at init)
         packed(params["W_K"]),
         packed(params["W_V"])], axis=1)    # (d_model, 3*d_model)

    w_o = params["W_O"].T                   # (d_model, d_model): packed '(h d)' -> out

    return {"W_QKV": w_qkv, "W_O": w_o, "n_heads": n_heads,
            "d_model": d_model, "d_per_head": dph}


# ----------------------------------------------------------------------------
# Tiling plan: 8-aligned blocks + common padded sequence length
# ----------------------------------------------------------------------------
def _plan_time_tiling(t, block_t, block_q, block_k):
    """Return (bt, bq, bk, t_pad): each block is a multiple of 8 or equals the
    full padded extent, and every block divides t_pad."""
    def r8(v):
        return max(8, (int(v) // 8) * 8)

    bt, bq, bk = r8(block_t), r8(block_q), r8(block_k)
    if t <= 8 or t <= min(bt, bq, bk):
        return t, t, t, t                       # one block per stage, no padding
    t8 = -(-t // 8) * 8
    small = [v for v in (bt, bq, bk) if v < t8]
    unit = 8
    for v in small:
        unit = unit * v // math.gcd(unit, v)
    t_pad = -(-t // unit) * unit
    bt = bt if bt < t8 else t_pad
    bq = bq if bq < t8 else t_pad
    bk = bk if bk < t8 else t_pad
    return bt, bq, bk, t_pad


# ----------------------------------------------------------------------------
# Kernel 1: fused Q/K/V projection (single wide matmul, lane-dense stores)
# ----------------------------------------------------------------------------
def _qkv_proj_kernel(x_ref, w_ref, q_ref, k_ref, v_ref, *, d_model):
    y = jnp.dot(x_ref[0], w_ref[...], preferred_element_type=jnp.float32)
    q_ref[0] = y[:, :d_model].astype(q_ref.dtype)
    k_ref[0] = y[:, d_model:2 * d_model].astype(k_ref.dtype)
    v_ref[0] = y[:, 2 * d_model:].astype(v_ref.dtype)


def qkv_projection(x_btd, w_qkv, *, block_t):
    """x_btd: (b, t_pad, d_model); w_qkv: (d_model, 3*d_model).
    Returns q, k, v each (b, t_pad, d_model) with heads packed head-major."""
    b, t_pad, d_model = x_btd.shape
    assert t_pad % block_t == 0
    grid = (b, t_pad // block_t)
    row_spec = pl.BlockSpec((1, block_t, d_model), lambda bi, ti: (bi, ti, 0))
    out_sds = jax.ShapeDtypeStruct((b, t_pad, d_model), x_btd.dtype)
    # TODO(synk): on v7x with very large d_model consider
    #             pipeline_mode=pl.Buffered(1) on the constant-index weight
    #             spec to halve its VMEM footprint.
    return pl.pallas_call(
        functools.partial(_qkv_proj_kernel, d_model=d_model),
        out_shape=(out_sds, out_sds, out_sds),
        grid=grid,
        in_specs=[row_spec,
                  pl.BlockSpec((d_model, 3 * d_model), lambda bi, ti: (0, 0))],
        out_specs=(row_spec, row_spec, row_spec),
        compiler_params=pltpu.CompilerParams(
            dimension_semantics=("parallel", "parallel"),
            vmem_limit_bytes=_vmem_limit_bytes()),
    )(x_btd, w_qkv)


# ----------------------------------------------------------------------------
# Kernel 2: flash attention (online softmax) fused with the output projection
# ----------------------------------------------------------------------------
def _flash_attn_out_kernel(q_ref, k_ref, v_ref, wo_ref, o_ref,
                           m_sc, l_sc, acc_sc,
                           *, n_heads, dph, block_k, t_actual, masked):
    # NOTE: the kv grid axis must stay LAST and 'arbitrary' (sequential):
    # the m/l/acc scratch accumulators carry state across it.
    ki = pl.program_id(2)

    @pl.when(ki == 0)
    def _init():
        m_sc[...] = jnp.full_like(m_sc, -jnp.inf)
        l_sc[...] = jnp.zeros_like(l_sc)
        acc_sc[...] = jnp.zeros_like(acc_sc)

    q_all = q_ref[0]          # (tq, d_model); q already scaled via W_Q fold
    k_all = k_ref[0]          # (tk, d_model)
    v_all = v_ref[0]          # (tk, d_model)

    if masked:                # static flag: only emitted when time axis was padded
        kpos = ki * block_k + jax.lax.broadcasted_iota(jnp.int32, (1, block_k), 1)
        kv_valid = kpos < t_actual

    for h in range(n_heads):
        lo = h * dph
        s = jax.lax.dot_general(                       # (tq, tk) scores, f32
            q_all[:, lo:lo + dph], k_all[:, lo:lo + dph],
            (((1,), (1,)), ((), ())), preferred_element_type=jnp.float32)
        if masked:
            s = jnp.where(kv_valid, s, -jnp.inf)
        m_prev = m_sc[h]                                            # (tq, 1)
        m_new = jnp.maximum(m_prev, jnp.max(s, axis=-1, keepdims=True))
        alpha = jnp.exp(m_prev - m_new)
        p = jnp.exp(s - m_new)                                      # (tq, tk)
        l_sc[h] = alpha * l_sc[h] + jnp.sum(p, axis=-1, keepdims=True)
        acc_sc[:, lo:lo + dph] = alpha * acc_sc[:, lo:lo + dph] + jnp.dot(
            p.astype(v_all.dtype), v_all[:, lo:lo + dph],
            preferred_element_type=jnp.float32)
        m_sc[h] = m_new

    @pl.when(ki == pl.num_programs(2) - 1)
    def _finalize():
        # Per-head softmax normalization (EUP reciprocal) + fused output
        # projection: one lane-dense (tq, d_model) store, no HBM round trip
        # for the attention tensor.
        for h in range(n_heads):
            lo = h * dph
            inv_l = pl.reciprocal(l_sc[h], approx=True)
            acc_sc[:, lo:lo + dph] = acc_sc[:, lo:lo + dph] * inv_l
        o_ref[0] = jnp.dot(acc_sc[...], wo_ref[...],
                           preferred_element_type=jnp.float32).astype(o_ref.dtype)


def flash_attention_output(q, k, v, w_o, *, n_heads, d_per_head,
                           block_q, block_k, t_actual):
    """q, k, v: (b, t_pad, d_model) head-packed; returns (b, t_pad, d_model)
    which is already the W_O-projected module output (padded rows garbage)."""
    b, t_pad, d_model = q.shape
    assert t_pad % block_q == 0 and t_pad % block_k == 0
    grid = (b, t_pad // block_q, t_pad // block_k)
    q_spec = pl.BlockSpec((1, block_q, d_model), lambda bi, qi, ki: (bi, qi, 0))
    kv_spec = pl.BlockSpec((1, block_k, d_model), lambda bi, qi, ki: (bi, ki, 0))
    return pl.pallas_call(
        functools.partial(_flash_attn_out_kernel, n_heads=n_heads, dph=d_per_head,
                          block_k=block_k, t_actual=t_actual,
                          masked=(t_pad != t_actual)),
        out_shape=jax.ShapeDtypeStruct((b, t_pad, d_model), q.dtype),
        grid=grid,
        in_specs=[q_spec, kv_spec, kv_spec,
                  pl.BlockSpec((d_model, d_model), lambda bi, qi, ki: (0, 0))],
        out_specs=pl.BlockSpec((1, block_q, d_model), lambda bi, qi, ki: (bi, qi, 0)),
        scratch_shapes=[
            pltpu.VMEM((n_heads, block_q, 1), jnp.float32),   # running max m
            pltpu.VMEM((n_heads, block_q, 1), jnp.float32),   # running sum l
            pltpu.VMEM((block_q, d_model), jnp.float32),      # packed output acc
        ],
        compiler_params=pltpu.CompilerParams(
            dimension_semantics=("parallel", "parallel", "arbitrary"),
            vmem_limit_bytes=_vmem_limit_bytes()),
    )(q, k, v, w_o)


# ----------------------------------------------------------------------------
# Full module forward
# ----------------------------------------------------------------------------
def multi_head_self_attention(x, prepared, *, block_t=256, block_q=128, block_k=128):
    """x: (t, b, d_model) time-first (matches the PyTorch module)."""
    t, b, d_model = x.shape
    n_heads = prepared["n_heads"]
    dph = prepared["d_per_head"]

    bt, bq, bk, t_pad = _plan_time_tiling(t, block_t, block_q, block_k)

    # Single layout change in / out; head split & merge live in the weights.
    x_btd = jnp.transpose(x, (1, 0, 2))                           # (b, t, d_model)
    if t_pad != t:
        x_btd = jnp.pad(x_btd, ((0, 0), (0, t_pad - t), (0, 0)))  # zero-pad time

    q, k, v = qkv_projection(x_btd, prepared["W_QKV"], block_t=bt)
    y_btd = flash_attention_output(q, k, v, prepared["W_O"],
                                   n_heads=n_heads, d_per_head=dph,
                                   block_q=bq, block_k=bk, t_actual=t)
    if t_pad != t:
        y_btd = y_btd[:, :t, :]
    return jnp.transpose(y_btd, (1, 0, 2))                        # (t, b, d_model)


# ----------------------------------------------------------------------------
# Pure-JAX reference (mirrors the PyTorch module exactly)
# ----------------------------------------------------------------------------
def reference_forward(x, params, n_heads):
    t, b, d_model = x.shape
    dph = d_model // n_heads
    scaling = float(dph) ** (-0.5)
    k = x @ params["W_K"].T
    v = x @ params["W_V"].T
    q = x @ params["W_Q"].T

    def split_heads(y):  # 't b (d h) -> b h t d'
        return jnp.transpose(y.reshape(t, b, dph, n_heads), (1, 3, 0, 2))

    qh, kh, vh = split_heads(q), split_heads(k), split_heads(v)
    s = jnp.einsum("bhid,bhjd->bhij", qh, kh) * scaling
    a = jax.nn.softmax(s, axis=-1)
    o = jnp.einsum("bhij,bhjd->bhid", a, vh)
    o = jnp.transpose(o, (2, 0, 1, 3)).reshape(t, b, d_model)     # 'b h t d -> t b (h d)'
    return o @ params["W_O"].T


if __name__ == "__main__":
    # Small shapes consistent with the module: seq=8, batch=2, d_model=32, heads=4
    T, B, D_MODEL, N_HEADS = 8, 2, 32, 4

    key = jax.random.PRNGKey(0)
    kx, kk, kv_, kq, ko, kx2, kx3 = jax.random.split(key, 7)

    x = jax.random.normal(kx, (T, B, D_MODEL), dtype=jnp.float32)
    wscale = 1.0 / jnp.sqrt(jnp.float32(D_MODEL))
    params = {
        "W_K": jax.random.normal(kk, (D_MODEL, D_MODEL), jnp.float32) * wscale,
        "W_V": jax.random.normal(kv_, (D_MODEL, D_MODEL), jnp.float32) * wscale,
        "W_Q": jax.random.normal(kq, (D_MODEL, D_MODEL), jnp.float32) * wscale,
        "W_O": jax.random.normal(ko, (D_MODEL, D_MODEL), jnp.float32) * wscale,
    }
    prepared = prepare_params(params, N_HEADS)

    # Tolerance covers the EUP approximate-reciprocal softmax normalization
    # (errors ~1e-4..1e-3 relative); real bugs would be orders of magnitude larger.
    TOL = dict(atol=1e-2, rtol=1e-2)

    out = multi_head_self_attention(x, prepared)
    out = jax.block_until_ready(out)
    ref = reference_forward(x, params, N_HEADS)
    assert out.shape == (T, B, D_MODEL)
    assert jnp.allclose(out, ref, **TOL), float(jnp.max(jnp.abs(out - ref)))

    # Multi-block flash path (2 q-blocks x 2 kv-blocks), no padding.
    T2 = 16
    x2 = jax.random.normal(kx2, (T2, B, D_MODEL), dtype=jnp.float32)
    out2 = multi_head_self_attention(x2, prepared, block_q=8, block_k=8)
    out2 = jax.block_until_ready(out2)
    ref2 = reference_forward(x2, params, N_HEADS)
    assert jnp.allclose(out2, ref2, **TOL), float(jnp.max(jnp.abs(out2 - ref2)))

    # Padded + masked-tail path: t=12 padded to 16, last kv block half masked.
    T3 = 12
    x3 = jax.random.normal(kx3, (T3, B, D_MODEL), dtype=jnp.float32)
    out3 = multi_head_self_attention(x3, prepared, block_q=8, block_k=8)
    out3 = jax.block_until_ready(out3)
    ref3 = reference_forward(x3, params, N_HEADS)
    assert out3.shape == (T3, B, D_MODEL)
    assert jnp.allclose(out3, ref3, **TOL), float(jnp.max(jnp.abs(out3 - ref3)))

    print("KERNEL_OK")
</pallas_src>

<mosaic_0001>
module attributes {stable_mosaic.version = 11 : i64} {
  func.func @_qkv_proj_kernel(%arg0: i32, %arg1: i32, %arg2: memref<1x8x32xf32, #tpu.memory_space<vmem>>, %arg3: memref<32x96xf32, #tpu.memory_space<vmem>>, %arg4: memref<1x8x32xf32, #tpu.memory_space<vmem>>, %arg5: memref<1x8x32xf32, #tpu.memory_space<vmem>>, %arg6: memref<1x8x32xf32, #tpu.memory_space<vmem>>) attributes {dimension_semantics = [#tpu.dimension_semantics<parallel>, #tpu.dimension_semantics<parallel>], iteration_bounds = array<i64: 2, 1>, scalar_prefetch = 0 : i64, scratch_operands = 0 : i64, tpu.core_type = #tpu.core_type<tc>, window_params = [{transform_indices = @transform_0, window_bounds = array<i64: 1, 8, 32>}, {pipeline_mode = #tpu.pipeline_mode<synchronous>, transform_indices = @transform_1, window_bounds = array<i64: 32, 96>}, {transform_indices = @transform_2, window_bounds = array<i64: 1, 8, 32>}, {transform_indices = @transform_3, window_bounds = array<i64: 1, 8, 32>}, {transform_indices = @transform_4, window_bounds = array<i64: 1, 8, 32>}]} {
    %c0 = arith.constant 0 : index
    %c0_0 = arith.constant 0 : index
    %c0_1 = arith.constant 0 : index
    %0 = vector.load %arg2[%c0, %c0_0, %c0_1] : memref<1x8x32xf32, #tpu.memory_space<vmem>>, vector<1x8x32xf32>
    %1 = vector.shape_cast %0 : vector<1x8x32xf32> to vector<8x32xf32>
    %c0_2 = arith.constant 0 : index
    %c0_3 = arith.constant 0 : index
    %2 = vector.load %arg3[%c0_2, %c0_3] : memref<32x96xf32, #tpu.memory_space<vmem>>, vector<32x96xf32>
    %cst = arith.constant dense<0.000000e+00> : vector<8x96xf32>
    %3 = tpu.matmul %1, %2, %cst {dimension_numbers = #tpu.dot_dimension_numbers<[1], [0], [0], [1], [0, 0, 1, 1], [], []>} : vector<8x32xf32>, vector<32x96xf32>, vector<8x96xf32> -> vector<8x96xf32>
    %4 = vector.extract_strided_slice %3 {offsets = [0, 0], sizes = [8, 32], strides = [1, 1]} : vector<8x96xf32> to vector<8x32xf32>
    %c0_4 = arith.constant 0 : index
    %c0_5 = arith.constant 0 : index
    %c0_6 = arith.constant 0 : index
    %5 = vector.load %arg4[%c0_4, %c0_5, %c0_6] : memref<1x8x32xf32, #tpu.memory_space<vmem>>, vector<1x8x32xf32>
    %6 = vector.shape_cast %5 : vector<1x8x32xf32> to vector<8x32xf32>
    %7 = vector.shape_cast %4 : vector<8x32xf32> to vector<1x8x32xf32>
    tpu.vector_store %arg4[%c0_4, %c0_5, %c0_6], %7 {strides = array<i32>} : memref<1x8x32xf32, #tpu.memory_space<vmem>>, vector<1x8x32xf32>,
    %8 = vector.extract_strided_slice %3 {offsets = [0, 32], sizes = [8, 32], strides = [1, 1]} : vector<8x96xf32> to vector<8x32xf32>
    %c0_7 = arith.constant 0 : index
    %c0_8 = arith.constant 0 : index
    %c0_9 = arith.constant 0 : index
    %9 = vector.load %arg5[%c0_7, %c0_8, %c0_9] : memref<1x8x32xf32, #tpu.memory_space<vmem>>, vector<1x8x32xf32>
    %10 = vector.shape_cast %9 : vector<1x8x32xf32> to vector<8x32xf32>
    %11 = vector.shape_cast %8 : vector<8x32xf32> to vector<1x8x32xf32>
    tpu.vector_store %arg5[%c0_7, %c0_8, %c0_9], %11 {strides = array<i32>} : memref<1x8x32xf32, #tpu.memory_space<vmem>>, vector<1x8x32xf32>,
    %12 = vector.extract_strided_slice %3 {offsets = [0, 64], sizes = [8, 32], strides = [1, 1]} : vector<8x96xf32> to vector<8x32xf32>
    %c0_10 = arith.constant 0 : index
    %c0_11 = arith.constant 0 : index
    %c0_12 = arith.constant 0 : index
    %13 = vector.load %arg6[%c0_10, %c0_11, %c0_12] : memref<1x8x32xf32, #tpu.memory_space<vmem>>, vector<1x8x32xf32>
    %14 = vector.shape_cast %13 : vector<1x8x32xf32> to vector<8x32xf32>
    %15 = vector.shape_cast %12 : vector<8x32xf32> to vector<1x8x32xf32>
    tpu.vector_store %arg6[%c0_10, %c0_11, %c0_12], %15 {strides = array<i32>} : memref<1x8x32xf32, #tpu.memory_space<vmem>>, vector<1x8x32xf32>,
    return
  }
  func.func @transform_0(%arg0: i32, %arg1: i32) -> (i32, i32, i32) {
    %c0_i32 = arith.constant 0 : i32
    %c0_i32_0 = arith.constant 0 : i32
    return %arg0, %arg1, %c0_i32 : i32, i32, i32
  }
  func.func @transform_1(%arg0: i32, %arg1: i32) -> (i32, i32) {
    %c0_i32 = arith.constant 0 : i32
    %c0_i32_0 = arith.constant 0 : i32
    %c0_i32_1 = arith.constant 0 : i32
    return %c0_i32, %c0_i32_0 : i32, i32
  }
  func.func @transform_2(%arg0: i32, %arg1: i32) -> (i32, i32, i32) {
    %c0_i32 = arith.constant 0 : i32
    %c0_i32_0 = arith.constant 0 : i32
    return %arg0, %arg1, %c0_i32 : i32, i32, i32
  }
  func.func @transform_3(%arg0: i32, %arg1: i32) -> (i32, i32, i32) {
    %c0_i32 = arith.constant 0 : i32
    %c0_i32_0 = arith.constant 0 : i32
    return %arg0, %arg1, %c0_i32 : i32, i32, i32
  }
  func.func @transform_4(%arg0: i32, %arg1: i32) -> (i32, i32, i32) {
    %c0_i32 = arith.constant 0 : i32
    %c0_i32_0 = arith.constant 0 : i32
    return %arg0, %arg1, %c0_i32 : i32, i32, i32
  }
}

</mosaic_0001>

<bundles_post_ra>
// kernel: tpu_custom_call.1
= control target key start
LH: loop header
LB: loop body
LE: loop exit
PB: predicated region body
PF: predicated region fallthrough
CT: control target
= control target key end

     0   :  { %s1166_s0 = inlined_call_operand.hbm [shape: f32[2,8,32], index: 0, kind: input, shape index: {}]   ;;  %s1167_s1 = inlined_call_operand.hbm [shape: f32[32,96], index: 1, kind: input, shape index: {}]   ;;  %s1168_s2 = inlined_call_operand.hbm [shape: f32[2,8,32], index: 2, kind: output, shape index: {0}]   ;;  %s1169_s3 = inlined_call_operand.hbm [shape: f32[2,8,32], index: 3, kind: output, shape index: {1}]   ;;  %s1170_s4 = inlined_call_operand.hbm [shape: f32[2,8,32], index: 4, kind: output, shape index: {2}]  }
   0x1   :  { %1173 = sst [smem:[#allocation15_spill]] %s1167_s1 }
   0x2   :  { %10 = vsyncpa [#allocation3], 0 }
   0x3   :  { %12 = vsyncpa [#allocation3 + $0x1], 0 }
   0x4   :  { %13 = vsyncpa [#allocation6], 0 }
   0x5   :  { %14 = vsyncpa [#allocation4], 0 }
   0x6   :  { %16 = vsyncpa [#allocation4 + $0x1], 0 }
   0x7   :  { %17 = vsyncpa [#allocation9], 0 }
   0x8   :  { %19 = vsyncpa [#allocation9 + $0x1], 0  ;;  %s921_s15 = smov 0   ;;  %s923_s16 = smov 0  }
   0x9   :  { %s925_s17 = smov 0   ;;  %s927_s18 = smov 0  }
   0xa   :  { %s929_s19 = smov 0   ;;  %s931_s20 = smov 0  }
   0xb LB: > { %s952_s21 = sadd.s32 4294967295, %s883_s20   ;;  %s1171_s22 = sadd.s32 4294967294, %s883_s20   ;;  %s883_s20 = sphi %s931_s20, %s25_s20   ;;  %s879_s19 = sphi %s929_s19, %s1192_s19   ;;  %s875_s18 = sphi %s927_s18, %s1191_s18   ;;  %s871_s17 = sphi %s925_s17, %s1190_s17   ;;  %s867_s16 = sphi %s923_s16, %s1189_s16   ;;  %s863_s15 = sphi %s921_s15, %s1188_s15  }
   0xc   : > { %p59_p0 = scmp.ne.s32.totalorder %s867_s16, %s863_s15  ;;  %p1172_p1 = scmp.eq.s32.totalorder %s952_s21, 0 }
   0xd   : > { %p112_p3 = scmp.eq.s32.totalorder %s1171_s22, 1  ;;  %p564_p5 = scmp.ge.s32.totalorder %s883_s20, 1 }
   0xe   : > { %p963_p4 = por %p1172_p1, %p59_p0  ;;  %p175_p7 = scmp.lt.s32.totalorder %s883_s20, 3 }
   0xf   : > { %p968_p6 = por %p112_p3, %p59_p0  ;;  %s885_s26 = smov [#allocation5]  }
  0x10   : > { %p973_p8 = pnand %p564_p5, %p175_p7  ;;  %s187_s27 = sshll.u32 %s885_s26, 4  ;;  %s188_s27 = int_to_ptr.vmem [resolvable:$true] %s187_s27 }
  0x11   : > { %s1175_s24 = scalar_select %p968_p6, 1, 0 }
  0x12   : > { %p612_p9 = pneg %p973_p8  ;;  %s37_s29 = sadd.s32 1, %s879_s19 }
  0x13   : > { %s700_s30 = scalar_lea.vmem %s188_s27, 512  ;;  %p708_p5 = scmp.lt.s32.totalorder %s188_s27, %s188_s27 }
  0x14   : > { %p982_p11 = pnand %p612_p9, %p1172_p1  ;;  %p701_p13 = scmp.ne.s32.totalorder %s188_s27, %s700_s30 }
  0x15   : > { %p709_p7 = scmp.lt.s32.totalorder %s700_s30, %s700_s30 }
  0x16   : > { %p691_p12 = pneg %p982_p11 }
  0x17   : > { %p710_p2 = por %p709_p7, %p708_p5 }
  0x18   : > { %p703_p0 = pnand %p701_p13, %p691_p12 }
  0x1a   : > { %p704_p3 = pneg %p703_p0 }
  0x1c   : > { %p711_p6 = pnand %p710_p2, %p704_p3 }
  0x1e   : > { %714 = shalt.err (!%p711_p6)
}
  0x1f   : > { %s886_s5 = smov 128   ;;  %s887_s6 = smov 8  }
  0x20   : > { %s1178_s1 = sld [smem:[#allocation15_spill]]  ;;  %p39_p2 = scmp.ge.s32.totalorder %s37_s29, 2 }
  0x21   : > { %s46_s9 = sadd.s32 1, %s871_s17  ;;  %p53_p6 = scmp.ne.s32.totalorder %s871_s17, %s867_s16 }
  0x22   : > { %p54_p9 = scmp.eq.s32.totalorder %s883_s20, 0  ;;  %s1194_s29 = smov (%p39_p2, %s37_s29), 0 }
  0x23   : > { %p1180_p13 = scmp.eq.s32.totalorder %s952_s21, 1  ;;  %s41_s12 = ssub.s32 %s879_s19, %s1194_s29 }
  0x24   : > { %p1000_p12 = por %p54_p9, %p53_p6  ;;  %p631_p3 = scmp.lt.s32.totalorder %s883_s20, 2 }
  0x25   : > { %p1006_p0 = por %p1180_p13, %p53_p6  ;;  %s201_s13 = sand.u32 1, %s871_s17  }
  0x26   : > { %615 = dma.hbm_to_vmem [thread:$0]  (!%p982_p11), %s1178_s1, 512, %s188_s27, [#allocation6], %s886_s5, %s886_s5, %s887_s6  }
  0x27   : > { %p44_p11 = scmp.eq.s32.totalorder %s41_s12, 0  ;;  %s567_s14 = sshll.u32 %s201_s13, 3 }
  0x28   : > { %s568_s27 = sshll.u32 %s879_s19, 7  ;;  %s205_s6 = scalar_lea.vmem [#allocation2], %s567_s14 }
  0x29   : > { %s1015_s26 = scalar_select %p44_p11, %s871_s17, %s46_s9  }
  0x2a   : > { %s211_s5 = scalar_lea.hbm %s1166_s0, %s568_s27  ;;  %s213_s7 = sshll.u32 %s205_s6, 4  ;;  %s214_s7 = int_to_ptr.vmem [resolvable:$true] %s213_s7 }
  0x2b   : > { %p1023_p5 = pnand %p631_p3, %p1000_p12  ;;  %s202_s22 = scalar_lea.sflag [#allocation3], %s201_s13 }
  0x2c   : > { %s728_s12 = scalar_lea.vmem %s214_s7, 128  ;;  %s888_s9 = smov [#allocation2]  }
  0x2d   : > { %p717_p7 = pneg %p1023_p5  ;;  %p729_p2 = scmp.ne.s32.totalorder %s214_s7, %s728_s12 }
  0x2e   : > { %s733_s1 = sshll.u32 %s888_s9, 4  ;;  %s734_s1 = int_to_ptr.vmem [resolvable:$false] %s733_s1 }
  0x2f   : > { %p731_p6 = pnand %p729_p2, %p717_p7  ;;  %s735_s27 = scalar_lea.vmem %s734_s1, 256 }
  0x30   : > { %p736_p13 = scmp.lt.s32.totalorder %s214_s7, %s734_s1  ;;  %p737_p11 = scmp.lt.s32.totalorder %s735_s27, %s728_s12 }
  0x31   : > { %p732_p9 = pneg %p731_p6 }
  0x32   : > { %p738_p10 = por %p737_p11, %p736_p13 }
  0x34   : > { %p739_p1 = pnand %p738_p10, %p732_p9 }
  0x36   : > { %742 = shalt.err (!%p739_p1)
}
  0x37   : > { %619 = dma.hbm_to_vmem [thread:$0]  (!%p1023_p5), %s211_s5, 128, %s214_s7, %s202_s22  }
  0x38   : > { %222 = sbr.rel (%p973_p8) target bundleno = 417 (0x1a1), region = 28  ;;  %s1034_s10 = sand.u32 (!%p973_p8), 1, %s867_s16  }
  0x39   : > { %s1037_s13 = sshll.u32 (!%p973_p8), %s1034_s10, 3  ;;  %s225_s1 = scalar_lea.sflag (!%p973_p8), [#allocation3], %s1034_s10 }
  0x3a   : > { %s228_s14 = scalar_lea.vmem (!%p973_p8), [#allocation2], %s1037_s13 }
  0x3d   : > { %846 = dma.done.wait (%p963_p4), %s225_s1, 128  }
  0x3e   : > { %848 = vsyncadd (%p963_p4), %s225_s1, 4294967168  ;;  %p1183_p1 = scmp.eq.s32.totalorder %s952_s21, 0 }
  0x40   : > { %850 = dma.done.wait (%p1183_p1), [#allocation6], 512   ;;  %p1184_p8 = pmov %p1183_p1 }
  0x41   : > { %v889_v0 = vmov 0.0   ;;  %vm890_vm0 = vmmov 0   ;;  %v271_v1 = vld [vmem:[#allocation5 + $0x18] sm:$0xff]  ;;  %v270_v2 = vld [vmem:[#allocation5 + $0x10] sm:$0xff]  ;;  %v269_v3 = vld [vmem:[#allocation5 + $0x8] sm:$0xff]  ;;  %vm272_vm1 = vcmask 261120  }
  0x42   : > { %852 = vsyncadd (%p1184_p8), [#allocation6], 4294966784  ;;  %589 = vmatprep.subr.mxu0 %v889_v0  ;;  %597 = vmatprep.mubr.msk.f32.mxu0 %vm890_vm0, %v889_v0  ;;  %v268_v4 = vld [vmem:[#allocation5] sm:$0xff]  ;;  %v267_v5 = vld [vmem:[%s228_s14] sm:$0xff]  ;;  %s1051_s22 = sshll.u32 %s875_s18, 7  ;;  %s252_s23 = scalar_lea.vmem [#allocation7], %s1037_s13 }
  0x43   : > { %590 = vmatpush3.msra.mxu0 %v271_v1  ;;  %s381_s25 = sshll.u32 %s252_s23, 4  ;;  %s1058_s5 = scalar_lea.hbm %s1168_s2, %s1051_s22  ;;  %s1060_s25 = int_to_ptr.vmem [resolvable:$true] %s381_s25 }
  0x44   : > { %591 = vmatprep.subr.mxu0 %v889_v0  ;;  %s891_s6 = smov 96   ;;  %s357_s18 = scalar_lea.sflag [#allocation4], %s1034_s10 }
  0x45   : > { %592 = vmatpush3.msra.mxu0 %v270_v2  ;;  %s743_s7 = scalar_lea.vmem %s1060_s25, 128  ;;  %s892_s8 = smov [#allocation7]  }
  0x46   : > { %593 = vmatprep.subr.mxu0 %v889_v0  ;;  %p744_p4 = scmp.ne.s32.totalorder %s1060_s25, %s743_s7  ;;  %s747_s12 = sshll.u32 %s892_s8, 4  ;;  %s748_s12 = int_to_ptr.vmem [resolvable:$false] %s747_s12 }
  0x47   : > { %594 = vmatpush3.msra.mxu0 %v269_v3  ;;  %s749_s9 = scalar_lea.vmem %s748_s12, 256  ;;  %p750_p3 = scmp.lt.s32.totalorder %s1060_s25, %s748_s12 }
  0x48   : > { %595 = vmatprep.subr.mxu0 %v889_v0  ;;  %p745_p10 = pnand %p744_p4, %p1006_p0  ;;  %p751_p5 = scmp.lt.s32.totalorder %s749_s9, %s743_s7 }
  0x49   : > { %596 = vmatpush3.msra.mxu0 %v268_v4 }
  0x4a   : > { %598 = vmatmul.mubr.msk.f32.vlgmr.msra.gmra.mxu0 %vm272_vm1, %v267_v5  ;;  %p746_p12 = pneg %p745_p10  ;;  %p752_p7 = por %p751_p5, %p750_p3 }
  0x4c   : > { %p753_p2 = pnand %p752_p7, %p746_p12 }
 0x10a   : > { %v342_v6 = vpop.f32.mrf.mxu0 }
 0x10b   : > { %346 = vst.msk [vmem:[%s252_s23] sm:$0xff] %vm272_vm1, %v342_v6  ;;  %348 = vrot.lane.b32.xlu0 %v342_v6, %s891_s6 }
 0x10c   : > { %v599_v7 = vpop.f32.mrf.mxu0 }
 0x10d   : > { %756 = shalt.err (!%p753_p2)
}
 0x10e   : > { %s757_s27 = scalar_lea.hbm %s1058_s5, 128  ;;  %s761_s14 = scalar_lea.hbm %s1168_s2, 256 }
 0x10f   : > { %p758_p6 = scmp.ne.s32.totalorder %s1058_s5, %s757_s27  ;;  %p762_p11 = scmp.lt.s32.totalorder %s1058_s5, %s1168_s2 }
 0x110   : > { %p763_p1 = scmp.lt.s32.totalorder %s761_s14, %s757_s27 }
 0x111   : > { %p759_p9 = pnand %p758_p6, %p1006_p0 }
 0x112   : > { %p764_p8 = por %p763_p1, %p762_p11 }
 0x113   : > { %p760_p13 = pneg %p759_p9 }
 0x115   : > { %p765_p4 = pnand %p764_p8, %p760_p13 }
 0x117   : > { %768 = shalt.err (!%p765_p4)
}
 0x118   : > { %606 = dma.vmem_to_hbm [thread:$0]  (%p1006_p0), %s1060_s25, 128, %s1058_s5, %s357_s18  }
 0x119   : > { %s893_s30 = smov 64   ;;  %s361_s6 = sand.u32 1, %s952_s21  }
 0x11a   : > { %352 = vrot.lane.b32.xlu0 %v342_v6, %s893_s30  ;;  %s259_s7 = scalar_lea.vmem [#allocation8], %s1037_s13  ;;  %s1090_s27 = scalar_lea.hbm %s1169_s3, %s1051_s22 }
 0x11b   : > { %s395_s8 = sshll.u32 %s259_s7, 4  ;;  %s266_s10 = scalar_lea.vmem [#allocation10], %s1037_s13  ;;  %s1092_s8 = int_to_ptr.vmem [resolvable:$true] %s395_s8 }
 0x11c   : > { %s409_s1 = sshll.u32 %s266_s10, 4  ;;  %s1098_s25 = scalar_lea.sflag [#allocation9], %s361_s6  ;;  %s410_s1 = int_to_ptr.vmem [resolvable:$true] %s409_s1 }
 0x11d   : > { %s769_s21 = scalar_lea.vmem %s1092_s8, 128  ;;  %s894_s5 = smov [#allocation8]  }
 0x11e   : > { %p770_p10 = scmp.ne.s32.totalorder %s1092_s8, %s769_s21  ;;  %s773_s18 = sshll.u32 %s894_s5, 4  ;;  %s774_s18 = int_to_ptr.vmem [resolvable:$false] %s773_s18 }
 0x11f   : > { %s775_s14 = scalar_lea.vmem %s774_s18, 256  ;;  %p776_p5 = scmp.lt.s32.totalorder %s1092_s8, %s774_s18 }
 0x120   : > { %p771_p12 = pnand %p770_p10, %p1006_p0  ;;  %p777_p7 = scmp.lt.s32.totalorder %s775_s14, %s769_s21 }
 0x122   : > { %p772_p3 = pneg %p771_p12  ;;  %p778_p2 = por %p777_p7, %p776_p5 }
 0x124   : > { %p779_p6 = pnand %p778_p2, %p772_p3 }
 0x17d   : > { %v349_v8 = vpop.permute.xlu0 %348 }
 0x17e   : > { %351 = vst.msk [vmem:[%s259_s7] sm:$0xff] %vm272_vm1, %v349_v8 }
 0x17f   : > { %782 = shalt.err (!%p779_p6)
}
 0x180   : > { %s783_s23 = scalar_lea.hbm %s1090_s27, 128  ;;  %s787_s6 = scalar_lea.hbm %s1169_s3, 256 }
 0x181   : > { %p784_p9 = scmp.ne.s32.totalorder %s1090_s27, %s783_s23  ;;  %p788_p1 = scmp.lt.s32.totalorder %s1090_s27, %s1169_s3 }
 0x182   : > { %p789_p8 = scmp.lt.s32.totalorder %s787_s6, %s783_s23 }
 0x183   : > { %p785_p13 = pnand %p784_p9, %p1006_p0 }
 0x184   : > { %p790_p4 = por %p789_p8, %p788_p1 }
 0x185   : > { %p786_p11 = pneg %p785_p13 }
 0x187   : > { %p791_p10 = pnand %p790_p4, %p786_p11 }
 0x189   : > { %794 = shalt.err (!%p791_p10)
}
 0x18a   : > { %607 = dma.vmem_to_hbm [thread:$0]  (%p1006_p0), %s1092_s8, 128, %s1090_s27, %s1098_s25  }
 0x18b   : > { %s407_s5 = scalar_lea.hbm %s1170_s4, %s1051_s22  ;;  %s795_s18 = scalar_lea.vmem %s410_s1, 128 }
 0x18c   : > { %v353_v9 = vpop.permute.xlu0 %352  ;;  %p796_p12 = scmp.ne.s32.totalorder %s410_s1, %s795_s18  ;;  %s895_s14 = smov [#allocation10]  }
 0x18d   : > { %355 = vst.msk [vmem:[%s266_s10] sm:$0xff] %vm272_vm1, %v353_v9  ;;  %s799_s23 = sshll.u32 %s895_s14, 4  ;;  %s800_s23 = int_to_ptr.vmem [resolvable:$false] %s799_s23 }
 0x18e   : > { %p797_p3 = pnand %p796_p12, %p1006_p0  ;;  %s801_s28 = scalar_lea.vmem %s800_s23, 256 }
 0x18f   : > { %p802_p7 = scmp.lt.s32.totalorder %s410_s1, %s800_s23  ;;  %p803_p2 = scmp.lt.s32.totalorder %s801_s28, %s795_s18 }
 0x190   : > { %p798_p5 = pneg %p797_p3 }
 0x191   : > { %p804_p6 = por %p803_p2, %p802_p7 }
 0x193   : > { %p805_p9 = pnand %p804_p6, %p798_p5 }
 0x195   : > { %808 = shalt.err (!%p805_p9)
}
 0x196   : > { %s809_s22 = scalar_lea.hbm %s407_s5, 128  ;;  %s813_s27 = scalar_lea.hbm %s1170_s4, 256 }
 0x197   : > { %p810_p13 = scmp.ne.s32.totalorder %s407_s5, %s809_s22  ;;  %p814_p8 = scmp.lt.s32.totalorder %s407_s5, %s1170_s4 }
 0x198   : > { %p815_p4 = scmp.lt.s32.totalorder %s813_s27, %s809_s22 }
 0x199   : > { %p811_p11 = pnand %p810_p13, %p1006_p0 }
 0x19a   : > { %p816_p10 = por %p815_p4, %p814_p8 }
 0x19b   : > { %p812_p1 = pneg %p811_p11 }
 0x19d   : > { %p817_p12 = pnand %p816_p10, %p812_p1 }
 0x19f   : > { %820 = shalt.err (!%p817_p12)
}
 0x1a0   : > { %608 = dma.vmem_to_hbm [thread:$0]  (%p1006_p0), %s410_s1, 128, %s407_s5, %s1098_s25  }
 0x1a1 PF: > { %s421_s6 = sand.u32 1, %s863_s15   ;;  %p1185_p3 = scmp.ne.s32.totalorder %s1175_s24, 0 }
 0x1a2   : > { %p1186_p5 = scmp.ge.s32.totalorder %s883_s20, 2  ;;  %s422_s7 = scalar_lea.sflag [#allocation4], %s421_s6 }
 0x1a4   : > { %p621_p7 = pnand %p1186_p5, %p1185_p3 }
 0x1a6   : > { %p622_p2 = pneg %p621_p7 }
 0x1a8   : > { %854 = dma.done.wait (%p622_p2), %s422_s7, 128  }
 0x1a9   : > { %856 = vsyncadd (%p622_p2), %s422_s7, 4294967168  ;;  %s1187_s12 = sadd.s32 4294967294, %s883_s20  }
 0x1aa   : > { %s430_s9 = sand.u32 1, %s1187_s12  }
 0x1ab   : > { %s431_s21 = scalar_lea.sflag [#allocation9], %s430_s9 }
 0x1ac   : > { %858 = dma.done.wait (%p622_p2), %s431_s21, 256  }
 0x1ad   : > { %860 = vsyncadd (%p622_p2), %s431_s21, 4294967040  ;;  %s25_s20 = sadd.s32 1, %s883_s20   ;;  %s1188_s15 = smov %s867_s16 }
 0x1ae   : > { %p22_p0 = scmp.ge.s32.totalorder %s25_s20, 4   ;;  %s1189_s16 = smov %s871_s17 }
 0x1af   : > { %s1190_s17 = smov %s1015_s26  ;;  %s1191_s18 = smov %s879_s19 }
 0x1b0   : > { %s1192_s19 = smov %s1194_s29  ;;  %24 = sbr.rel (!%p22_p0) target bundleno = 11 (0xb), region = 109 }
 0x1b5   :  { %445 = vsyncpa [#allocation3], 1 }
 0x1b6   :  { %447 = vsyncpa [#allocation3 + $0x1], 1 }
 0x1b7   :  { %448 = vsyncpa [#allocation6], 1 }
 0x1b8   :  { %449 = vsyncpa [#allocation4], 1 }
 0x1b9   :  { %451 = vsyncpa [#allocation4 + $0x1], 1 }
 0x1ba   :  { %452 = vsyncpa [#allocation9], 1 }
 0x1bb   :  { %454 = vsyncpa [#allocation9 + $0x1], 1 }

</bundles_post_ra>
